<compile_context>
chip_gen: v7x
topology: tpu7x:2x2x1
jax: 0.10.0
libtpu: 0.0.40
codegen_flags: <defaults>
</compile_context>

<pallas_src>
import functools

import jax
import jax.numpy as jnp
from jax.experimental import pallas as pl
from jax.experimental.pallas import tpu as pltpu

INDIM = 1024   # fixed by the module: RegressionNetwork(1024, 1)
OUTDIM = 1


def _multitask_matvec_kernel(x_ref, w_ref, o_ref):
    # x_ref: (tb, T*D)  batch tile, all tasks flattened along lanes
    # w_ref: (T, D)     all task weight rows (resident across the grid)
    # o_ref: (tb, T)    stacked per-task outputs
    T, D = w_ref.shape
    x = x_ref[...]                                   # (tb, T*D) f32
    w = w_ref[...]                                   # (T, D)    f32
    cols = []
    for t in range(T):                               # T is small & static
        xt = x[:, t * D:(t + 1) * D]                 # lane-aligned view (tb, D)
        # VPU elementwise multiply + XLU lane reduction; f32 accumulation.
        cols.append(jnp.sum(xt * w[t][None, :], axis=-1, keepdims=True))  # (tb, 1)
    o_ref[...] = jnp.concatenate(cols, axis=-1).astype(o_ref.dtype)


def _pick_batch_tile(B, T, D, itemsize=4, budget_bytes=12 * 1024 * 1024):
    """Largest legal batch tile:
       - tb == B (full dim, always legal), or tb % 8 == 0 and B % tb == 0
       - double-buffered x tile (2 * tb * T * D * itemsize) fits the budget."""
    per_row = 2 * T * D * itemsize
    cap = max(8, budget_bytes // per_row)
    if B <= cap:
        return B
    tb = (min(cap, B) // 8) * 8
    while tb >= 8:
        if B % tb == 0:
            return tb
        tb -= 8
    return B  # fallback: single full-batch block (legal; may exceed budget)


@functools.partial(jax.jit, static_argnames=("tb",))
def multitask_regression_forward(x, weights, *, tb):
    """x: [B, T, D], weights: [T, D] -> stacked outputs [B, T]."""
    B, T, D = x.shape
    assert D == INDIM and weights.shape == (T, D)
    assert B % tb == 0

    x2d = x.reshape(B, T * D)                       # free view of contiguous x

    out = pl.pallas_call(
        _multitask_matvec_kernel,
        out_shape=jax.ShapeDtypeStruct((B, T), jnp.float32),
        grid_spec=pl.GridSpec(
            grid=(B // tb,),
            in_specs=[
                # x batch tile: (tb, T*D) -> lanes = 3072 (mult. of 128)
                pl.BlockSpec((tb, T * D), lambda b: (b, 0)),
                # weights: same block every step -> stays resident in VMEM
                pl.BlockSpec((T, D), lambda b: (0, 0)),
            ],
            out_specs=pl.BlockSpec((tb, T), lambda b: (b, 0)),
        ),
        compiler_params=pltpu.CompilerParams(
            dimension_semantics=("parallel",),       # batch tiles split across TCs
        ),
    )(x2d, weights)
    return out


class MultiTaskRegressionNetworkPallas:
    """Mirrors the PyTorch module: holds per-task Linear(1024, 1, bias=False)."""

    def __init__(self, num_tasks, key):
        self.num_tasks = num_tasks
        # Deterministic init (mimics nn.Linear's uniform(-1/sqrt(indim), 1/sqrt(indim)))
        bound = 1.0 / (INDIM ** 0.5)
        self.weights = jax.random.uniform(
            key, (num_tasks, INDIM), dtype=jnp.float32, minval=-bound, maxval=bound
        )  # [T, D]

    def __call__(self, x):
        B, T, D = x.shape
        assert T == self.num_tasks and D == INDIM
        tb = _pick_batch_tile(B, T, D)
        out = multitask_regression_forward(x, self.weights, tb=tb)  # [B, T]
        # Split into the module's list-of-[B,1] outputs outside the jitted hot path.
        regression_outputs = [out[:, i:i + 1] for i in range(self.num_tasks)]
        # TODO(synk): PyTorch returns the nn.Linear module itself per task; we return
        # the weight arrays (equivalent to params.weight.data in the caller loop).
        regression_params = [self.weights[i:i + 1] for i in range(self.num_tasks)]  # [1, D]
        return regression_outputs, regression_params


if __name__ == "__main__":
    key = jax.random.PRNGKey(0)
    k_x, k_w = jax.random.split(key)

    batch = 8
    num_tasks = 3

    x = jax.random.normal(k_x, (batch, num_tasks, INDIM), dtype=jnp.float32)

    model = MultiTaskRegressionNetworkPallas(num_tasks, k_w)
    outputs, params = model(x)
    outputs = [jax.block_until_ready(o) for o in outputs]

    # Pure-JAX reference check
    ref = [x[:, i, :] @ model.weights[i][:, None] for i in range(num_tasks)]
    for o, r in zip(outputs, ref):
        assert o.shape == (batch, OUTDIM)
        assert jnp.allclose(o, r, atol=1e-4, rtol=1e-4)
    for p in params:
        assert p.shape == (1, INDIM)

    print("KERNEL_OK")
</pallas_src>

<mosaic_0001>
module attributes {stable_mosaic.version = 11 : i64} {
  func.func @_multitask_matvec_kernel(%arg0: i32, %arg1: memref<8x3072xf32, #tpu.memory_space<vmem>>, %arg2: memref<3x1024xf32, #tpu.memory_space<vmem>>, %arg3: memref<8x3xf32, #tpu.memory_space<vmem>>) attributes {dimension_semantics = [#tpu.dimension_semantics<parallel>], iteration_bounds = array<i64: 1>, scalar_prefetch = 0 : i64, scratch_operands = 0 : i64, tpu.core_type = #tpu.core_type<tc>, window_params = [{transform_indices = @transform_0, window_bounds = array<i64: 8, 3072>}, {pipeline_mode = #tpu.pipeline_mode<synchronous>, transform_indices = @transform_1, window_bounds = array<i64: 3, 1024>}, {transform_indices = @transform_2, window_bounds = array<i64: 8, 3>}]} {
    %c0 = arith.constant 0 : index
    %c0_0 = arith.constant 0 : index
    %0 = vector.load %arg1[%c0, %c0_0] : memref<8x3072xf32, #tpu.memory_space<vmem>>, vector<8x3072xf32>
    %c0_1 = arith.constant 0 : index
    %c0_2 = arith.constant 0 : index
    %1 = vector.load %arg2[%c0_1, %c0_2] : memref<3x1024xf32, #tpu.memory_space<vmem>>, vector<3x1024xf32>
    %2 = vector.extract_strided_slice %0 {offsets = [0, 0], sizes = [8, 1024], strides = [1, 1]} : vector<8x3072xf32> to vector<8x1024xf32>
    %3 = vector.extract_strided_slice %1 {offsets = [0, 0], sizes = [1, 1024], strides = [1, 1]} : vector<3x1024xf32> to vector<1x1024xf32>
    %4 = vector.shape_cast %3 : vector<1x1024xf32> to vector<1024xf32>
    %5 = vector.shape_cast %4 : vector<1024xf32> to vector<1x1024xf32>
    %6 = vector.broadcast %5 : vector<1x1024xf32> to vector<8x1024xf32>
    %7 = arith.mulf %2, %6 : vector<8x1024xf32>
    %cst = arith.constant dense<0.000000e+00> : vector<8xf32>
    %8 = vector.multi_reduction <add>, %7, %cst [1] : vector<8x1024xf32> to vector<8xf32>
    %9 = vector.shape_cast %8 : vector<8xf32> to vector<8x1xf32>
    %10 = vector.extract_strided_slice %0 {offsets = [0, 1024], sizes = [8, 1024], strides = [1, 1]} : vector<8x3072xf32> to vector<8x1024xf32>
    %11 = vector.extract_strided_slice %1 {offsets = [1, 0], sizes = [1, 1024], strides = [1, 1]} : vector<3x1024xf32> to vector<1x1024xf32>
    %12 = vector.shape_cast %11 : vector<1x1024xf32> to vector<1024xf32>
    %13 = vector.shape_cast %12 : vector<1024xf32> to vector<1x1024xf32>
    %14 = vector.broadcast %13 : vector<1x1024xf32> to vector<8x1024xf32>
    %15 = arith.mulf %10, %14 : vector<8x1024xf32>
    %cst_3 = arith.constant dense<0.000000e+00> : vector<8xf32>
    %16 = vector.multi_reduction <add>, %15, %cst_3 [1] : vector<8x1024xf32> to vector<8xf32>
    %17 = vector.shape_cast %16 : vector<8xf32> to vector<8x1xf32>
    %18 = vector.extract_strided_slice %0 {offsets = [0, 2048], sizes = [8, 1024], strides = [1, 1]} : vector<8x3072xf32> to vector<8x1024xf32>
    %19 = vector.extract_strided_slice %1 {offsets = [2, 0], sizes = [1, 1024], strides = [1, 1]} : vector<3x1024xf32> to vector<1x1024xf32>
    %20 = vector.shape_cast %19 : vector<1x1024xf32> to vector<1024xf32>
    %21 = vector.shape_cast %20 : vector<1024xf32> to vector<1x1024xf32>
    %22 = vector.broadcast %21 : vector<1x1024xf32> to vector<8x1024xf32>
    %23 = arith.mulf %18, %22 : vector<8x1024xf32>
    %cst_4 = arith.constant dense<0.000000e+00> : vector<8xf32>
    %24 = vector.multi_reduction <add>, %23, %cst_4 [1] : vector<8x1024xf32> to vector<8xf32>
    %25 = vector.shape_cast %24 : vector<8xf32> to vector<8x1xf32>
    %26 = tpu.concatenate %9, %17, %25 in 1 : vector<8x1xf32>, vector<8x1xf32>, vector<8x1xf32> -> vector<8x3xf32>
    %c0_5 = arith.constant 0 : index
    %c0_6 = arith.constant 0 : index
    %27 = vector.load %arg3[%c0_5, %c0_6] : memref<8x3xf32, #tpu.memory_space<vmem>>, vector<8x3xf32>
    tpu.vector_store %arg3[%c0_5, %c0_6], %26 {strides = array<i32>} : memref<8x3xf32, #tpu.memory_space<vmem>>, vector<8x3xf32>,
    return
  }
  func.func @transform_0(%arg0: i32) -> (i32, i32) {
    %c0_i32 = arith.constant 0 : i32
    %c0_i32_0 = arith.constant 0 : i32
    return %arg0, %c0_i32 : i32, i32
  }
  func.func @transform_1(%arg0: i32) -> (i32, i32) {
    %c0_i32 = arith.constant 0 : i32
    %c0_i32_0 = arith.constant 0 : i32
    %c0_i32_1 = arith.constant 0 : i32
    return %c0_i32, %c0_i32_0 : i32, i32
  }
  func.func @transform_2(%arg0: i32) -> (i32, i32) {
    %c0_i32 = arith.constant 0 : i32
    %c0_i32_0 = arith.constant 0 : i32
    return %arg0, %c0_i32 : i32, i32
  }
}

</mosaic_0001>

<bundles_post_ra>
// kernel: multitask_regression_forward.1
= control target key start
LH: loop header
LB: loop body
LE: loop exit
PB: predicated region body
PF: predicated region fallthrough
CT: control target
= control target key end

     0   :  { %7 = vsyncpa [#allocation3], 0  ;;  %s512_s0 = inlined_call_operand.hbm [shape: f32[8,3072], index: 0, kind: input, shape index: {}]   ;;  %s513_s1 = inlined_call_operand.hbm [shape: f32[3,1024], index: 1, kind: input, shape index: {}]   ;;  %s514_s2 = inlined_call_operand.vmem [shape: f32[8,3], index: 2, kind: output, shape index: {}]  }
   0x1   :  { %8 = vsyncpa [#allocation5], 0  ;;  %s396_s9 = smov [#allocation2]   ;;  %s397_s11 = smov [#allocation4]  }
   0x2   :  { %s15_s10 = sshll.u32 %s396_s9, 4  ;;  %s25_s12 = sshll.u32 %s397_s11, 4  ;;  %s16_s10 = int_to_ptr.vmem [resolvable:$true] %s15_s10  ;;  %s26_s12 = int_to_ptr.vmem [resolvable:$true] %s25_s12 }
   0x3   :  { %s348_s15 = scalar_lea.hbm %s512_s0, 3072 }
   0x4   :  { %p349_p0 = scmp.ne.s32.totalorder %s512_s0, %s348_s15  ;;  %p352_p1 = scmp.lt.u32.totalorder %s348_s15, %s512_s0 }
   0x6   :  { %p354_p2 = pnand %p352_p1, %p349_p0 }
   0x8   :  { %357 = shalt.err (!%p354_p2)
}
   0x9   :  { %s358_s20 = scalar_lea.vmem %s16_s10, 3072  ;;  %p363_p4 = scmp.lt.s32.totalorder %s16_s10, %s16_s10 }
   0xa   :  { %p359_p3 = scmp.ne.s32.totalorder %s16_s10, %s358_s20  ;;  %p364_p5 = scmp.lt.s32.totalorder %s358_s20, %s358_s20 }
   0xc   :  { %p365_p6 = por %p364_p5, %p363_p4 }
   0xe   :  { %p366_p7 = pnand %p365_p6, %p359_p3 }
  0x10   :  { %369 = shalt.err (!%p366_p7)
}
  0x11   :  { %18 = dma.hbm_to_vmem [thread:$0]  %s512_s0, 3072, %s16_s10, [#allocation3]  }
  0x12   :  { %s370_s25 = scalar_lea.hbm %s513_s1, 512 }
  0x13   :  { %p371_p8 = scmp.ne.s32.totalorder %s513_s1, %s370_s25  ;;  %p374_p9 = scmp.lt.u32.totalorder %s370_s25, %s513_s1 }
  0x15   :  { %p376_p10 = pnand %p374_p9, %p371_p8 }
  0x17   :  { %379 = shalt.err (!%p376_p10)
}
  0x18   :  { %s380_s30 = scalar_lea.vmem %s26_s12, 512  ;;  %p385_p12 = scmp.lt.s32.totalorder %s26_s12, %s26_s12 }
  0x19   :  { %p381_p11 = scmp.ne.s32.totalorder %s26_s12, %s380_s30  ;;  %p386_p13 = scmp.lt.s32.totalorder %s380_s30, %s380_s30 }
  0x1b   :  { %p387_p0 = por %p386_p13, %p385_p12 }
  0x1d   :  { %p388_p1 = pnand %p387_p0, %p381_p11 }
  0x1f   :  { %391 = shalt.err (!%p388_p1)
}
  0x20   :  { %28 = dma.hbm_to_vmem [thread:$0]  %s513_s1, 512, %s26_s12, [#allocation5]  }
  0x21   :  { %392 = dma.done.wait [#allocation3], 3072  }
  0x22   :  { %393 = vsyncadd [#allocation3], 4294964224 }
  0x23   :  { %394 = dma.done.wait [#allocation5], 512  }
  0x24   :  { %395 = vsyncadd [#allocation5], 4294966784  ;;  %v67_v0 = vlaneseq  ;;  %v437_v4 = vld [vmem:[#allocation4] sm:$0x77]  ;;  %v443_v7 = vld [vmem:[#allocation4 + $0x8] sm:$0x77] }
  0x25   :  { %v445_v8 = vld [vmem:[#allocation4 + $0x10] sm:$0x77]  ;;  %v447_v9 = vld [vmem:[#allocation4 + $0x18] sm:$0x77]  ;;  %v35_v12 = vld [vmem:[#allocation2] sm:$0xff]  ;;  %vm334_vm0 = vcmask 7168  }
  0x26   :  { %v68_v1 = vshrl.u32 %v67_v0, 7  ;;  %v36_v13 = vld [vmem:[#allocation2 + $0x8] sm:$0xff]  ;;  %v37_v18 = vld [vmem:[#allocation2 + $0x10] sm:$0xff]  ;;  %v38_v22 = vld [vmem:[#allocation2 + $0x18] sm:$0xff]  ;;  %vm336_vm1 = vcmask 15360   ;;  %vm338_vm2 = vcmask 23552  }
  0x27   :  { %v39_v27 = vld [vmem:[#allocation2 + $0x20] sm:$0xff]  ;;  %v40_v35 = vld [vmem:[#allocation2 + $0x28] sm:$0xff]  ;;  %v41_v40 = vld [vmem:[#allocation2 + $0x30] sm:$0xff] }
  0x28   :  { %v69_v2 = vsub.s32 0, %v68_v1  ;;  %v73_v3 = vsub.s32 4, %v68_v1  ;;  %v439_v5 = vsub.s32 1, %v68_v1  ;;  %v441_v6 = vsub.s32 5, %v68_v1  ;;  %v43_v43 = vld [vmem:[#allocation2 + $0x40] sm:$0xff]  ;;  %v42_v46 = vld [vmem:[#allocation2 + $0x38] sm:$0xff] }
  0x29   :  { %v461_v34 = vsub.s32 2, %v68_v1  ;;  %v44_v48 = vld [vmem:[#allocation2 + $0x48] sm:$0xff]  ;;  %v45_v49 = vld [vmem:[#allocation2 + $0x50] sm:$0xff]  ;;  %v46_v54 = vld [vmem:[#allocation2 + $0x58] sm:$0xff]  ;;  %v475_v57 = vsub.s32 6, %v68_v1 }
  0x2a   :  { %v70_v10 = vrot.slane %v437_v4, %v69_v2  ;;  %v74_v11 = vrot.slane %v437_v4, %v73_v3  ;;  %v78_v14 = vrot.slane %v443_v7, %v69_v2  ;;  %v82_v15 = vrot.slane %v443_v7, %v73_v3 }
  0x2b   :  { %v86_v16 = vrot.slane %v445_v8, %v69_v2  ;;  %v90_v17 = vrot.slane %v445_v8, %v73_v3  ;;  %v94_v19 = vrot.slane %v447_v9, %v69_v2  ;;  %v98_v23 = vrot.slane %v447_v9, %v73_v3 }
  0x2c   :  { %v110_v20 = vrot.slane %v70_v10, %v69_v2  ;;  %v114_v21 = vrot.slane %v74_v11, %v69_v2  ;;  %v118_v24 = vrot.slane %v78_v14, %v69_v2  ;;  %v122_v25 = vrot.slane %v82_v15, %v69_v2  ;;  %v47_v10 = vld [vmem:[#allocation2 + $0x60] sm:$0xff] }
  0x2d   :  { %v126_v26 = vrot.slane %v86_v16, %v69_v2  ;;  %v159_v30 = vrot.slane %v437_v4, %v439_v5  ;;  %v163_v31 = vrot.slane %v437_v4, %v441_v6  ;;  %v130_v32 = vrot.slane %v90_v17, %v69_v2 }
  0x2e   :  { %v139_v28 = vmul.f32 %v110_v20, %v35_v12  ;;  %v140_v29 = vmul.f32 %v114_v21, %v36_v13  ;;  %v141_v33 = vmul.f32 %v118_v24, %v37_v18  ;;  %v134_v36 = vrot.slane %v94_v19, %v69_v2  ;;  %v48_v18 = vld [vmem:[#allocation2 + $0x68] sm:$0xff] }
  0x2f   :  { %v142_v37 = vmul.f32 %v122_v25, %v38_v22  ;;  %v167_v39 = vrot.slane %v443_v7, %v439_v5  ;;  %v138_v41 = vrot.slane %v98_v23, %v69_v2  ;;  %v143_v42 = vmul.f32 %v126_v26, %v39_v27  ;;  %v51_v23 = vld [vmem:[#allocation2 + $0x80] sm:$0xff]  ;;  %v52_v24 = vld [vmem:[#allocation2 + $0x88] sm:$0xff]  ;;  %v49_v27 = vld [vmem:[#allocation2 + $0x70] sm:$0xff] }
  0x30   :  { %v147_v38 = vadd.f32 %v140_v29, %v139_v28  ;;  %v171_v44 = vrot.slane %v443_v7, %v441_v6  ;;  %v175_v45 = vrot.slane %v445_v8, %v439_v5  ;;  %v179_v50 = vrot.slane %v445_v8, %v441_v6  ;;  %v53_v28 = vld [vmem:[#allocation2 + $0x90] sm:$0xff] }
  0x31   :  { %v199_v51 = vrot.slane %v159_v30, %v439_v5  ;;  %v203_v52 = vrot.slane %v163_v31, %v439_v5  ;;  %v144_v53 = vmul.f32 %v130_v32, %v40_v35  ;;  %v207_v55 = vrot.slane %v167_v39, %v439_v5  ;;  %v54_v35 = vld [vmem:[#allocation2 + $0x98] sm:$0xff] }
  0x32   :  { %v148_v47 = vadd.f32 %v147_v38, %v141_v33  ;;  %v211_v56 = vrot.slane %v171_v44, %v439_v5  ;;  %v145_v58 = vmul.f32 %v134_v36, %v41_v40  ;;  %v183_v60 = vrot.slane %v447_v9, %v439_v5 }
  0x33   :  { %v228_v61 = vmul.f32 %v199_v51, %v43_v43  ;;  %v146_v62 = vmul.f32 %v138_v41, %v42_v46  ;;  %v215_v63 = vrot.slane %v175_v45, %v439_v5  ;;  %v229_v0 = vmul.f32 %v203_v52, %v44_v48  ;;  %v55_v43 = vld [vmem:[#allocation2 + $0xa0] sm:$0xff] }
  0x34   :  { %v149_v59 = vadd.f32 %v148_v47, %v142_v37  ;;  %v230_v2 = vmul.f32 %v207_v55, %v45_v49  ;;  %v187_v11 = vrot.slane %v447_v9, %v441_v6  ;;  %v219_v12 = vrot.slane %v179_v50, %v439_v5  ;;  %v50_v37 = vld [vmem:[#allocation2 + $0x78] sm:$0xff]  ;;  %v56_v50 = vld [vmem:[#allocation2 + $0xa8] sm:$0xff]  ;;  %v57_v55 = vld [vmem:[#allocation2 + $0xb0] sm:$0xff] }
  0x35   :  { %v231_v1 = vmul.f32 %v211_v56, %v46_v54  ;;  %v236_v13 = vadd.f32 %v229_v0, %v228_v61  ;;  %v248_v14 = vrot.slane %v437_v4, %v461_v34  ;;  %v252_v15 = vrot.slane %v437_v4, %v475_v57  ;;  %v58_v61 = vld [vmem:[#allocation2 + $0xb8] sm:$0xff] }
  0x36   :  { %v150_v3 = vadd.f32 %v149_v59, %v143_v42  ;;  %v256_v16 = vrot.slane %v443_v7, %v461_v34  ;;  %v223_v19 = vrot.slane %v183_v60, %v439_v5  ;;  %v260_v6 = vrot.slane %v443_v7, %v475_v57 }
  0x37   :  { %v264_v20 = vrot.slane %v445_v8, %v461_v34  ;;  %v232_v21 = vmul.f32 %v215_v63, %v47_v10  ;;  %v237_v22 = vadd.f32 %v236_v13, %v230_v2  ;;  %v268_v4 = vrot.slane %v445_v8, %v475_v57 }
  0x38   :  { %v151_v17 = vadd.f32 %v150_v3, %v144_v53  ;;  %v288_v25 = vrot.slane %v248_v14, %v461_v34  ;;  %v292_v29 = vrot.slane %v252_v15, %v461_v34  ;;  %v296_v30 = vrot.slane %v256_v16, %v461_v34 }
  0x39   :  { %v300_v7 = vrot.slane %v260_v6, %v461_v34  ;;  %v227_v31 = vrot.slane %v187_v11, %v439_v5  ;;  %v233_v32 = vmul.f32 %v219_v12, %v48_v18  ;;  %v238_v33 = vadd.f32 %v237_v22, %v231_v1 }
  0x3a   :  { %v152_v26 = vadd.f32 %v151_v17, %v145_v58  ;;  %v272_v36 = vrot.slane %v447_v9, %v461_v34  ;;  %v304_v38 = vrot.slane %v264_v20, %v461_v34  ;;  %v317_v39 = vmul.f32 %v288_v25, %v51_v23 }
  0x3b   :  { %v318_v40 = vmul.f32 %v292_v29, %v52_v24  ;;  %v234_v41 = vmul.f32 %v223_v19, %v49_v27  ;;  %v239_v42 = vadd.f32 %v238_v33, %v232_v21  ;;  %v319_v44 = vmul.f32 %v296_v30, %v53_v28 }
  0x3c   :  { %v153_v8 = vadd.f32 %v152_v26, %v146_v62  ;;  %v276_v5 = vrot.slane %v447_v9, %v475_v57  ;;  %v308_v45 = vrot.slane %v268_v4, %v461_v34  ;;  %v320_v46 = vmul.f32 %v300_v7, %v54_v35 }
  0x3d   :  { %v325_v47 = vadd.f32 %v318_v40, %v317_v39  ;;  %v235_v48 = vmul.f32 %v227_v31, %v50_v37  ;;  %v240_v49 = vadd.f32 %v239_v42, %v233_v32  ;;  %v312_v51 = vrot.slane %v272_v36, %v461_v34 }
  0x3e   :  { %154 = vadd.xlane.f32.xlu0 %v153_v8  ;;  %v321_v52 = vmul.f32 %v304_v38, %v55_v43  ;;  %v316_v56 = vrot.slane %v276_v5, %v461_v34  ;;  %v322_v58 = vmul.f32 %v308_v45, %v56_v50 }
  0x3f   :  { %v326_v53 = vadd.f32 %v325_v47, %v319_v44  ;;  %v241_v54 = vadd.f32 %v240_v49, %v234_v41  ;;  %v323_v9 = vmul.f32 %v312_v51, %v57_v55 }
  0x40   :  { %v324_v62 = vmul.f32 %v316_v56, %v58_v61 }
  0x41   :  { %v327_v59 = vadd.f32 %v326_v53, %v320_v46  ;;  %v242_v60 = vadd.f32 %v241_v54, %v235_v48 }
  0x43   :  { %v328_v57 = vadd.f32 %v327_v59, %v321_v52  ;;  %243 = vadd.xlane.f32.xlu0 %v242_v60 }
  0x45   :  { %v329_v63 = vadd.f32 %v328_v57, %v322_v58 }
  0x47   :  { %v330_v0 = vadd.f32 %v329_v63, %v323_v9 }
  0x49   :  { %v331_v2 = vadd.f32 %v330_v0, %v324_v62 }
  0x4b   :  { %332 = vadd.xlane.f32.xlu1 %v331_v2 }
  0xcb   :  { %v155_v3 = vpop.xlane.xlu0 %154 }
  0xd0   :  { %v244_v10 = vpop.xlane.xlu0 %243 }
  0xd1   :  { %v335_v11 = vsel %vm334_vm0, %v155_v3, %v244_v10 }
  0xd8   :  { %v333_v12 = vpop.xlane.xlu1 %332 }
  0xd9   :  { %v337_v34 = vsel %vm336_vm1, %v335_v11, %v333_v12 }
  0xda   :  { %339 = vst.msk [vmem:[%s514_s2] sm:$0xff] %vm338_vm2, %v337_v34 }
  0xdb   :  { %344 = vsyncpa [#allocation3], 1 }
  0xdc   :  { %345 = vsyncpa [#allocation5], 1 }

</bundles_post_ra>
